<compile_context>
chip_gen: v5e
topology: v5e:2x2
jax: 0.10.0
libtpu: 0.0.40
codegen_flags: <defaults>
</compile_context>

<pallas_src>
import functools

import jax
import jax.numpy as jnp
from jax import lax
from jax.experimental import pallas as pl
from jax.experimental.pallas import tpu as pltpu


def _round_up(n, m):
    return ((n + m - 1) // m) * m


def _packed_layout(input_size, hidden_size, output_size):
    """Row/lane layout of the single packed parameter buffer."""
    lanes = max(_round_up(hidden_size, 128), _round_up(output_size, 128))
    r_wih = 0                                      # (I, H)   W_ih^T
    r_whh = r_wih + _round_up(input_size, 8)       # (H, H)   W_hh^T
    r_b = r_whh + _round_up(hidden_size, 8)        # (1, H)   b_ih + b_hh
    r_who = r_b + 8                                # (H, Opad) W_ho^T
    r_bo = r_who + _round_up(hidden_size, 8)       # (1, Opad) b_o
    rows = r_bo + 8
    return rows, lanes, r_wih, r_whh, r_b, r_who, r_bo


def pack_char_rnn_params(w_ih, w_hh, b_ih, b_hh, w_ho, b_ho):
    """One-time pack: pre-transpose weights, sum RNN biases, pad lanes to 128."""
    f32 = jnp.float32
    H, I = w_ih.shape
    O = w_ho.shape[0]
    rows, lanes, r_wih, r_whh, r_b, r_who, r_bo = _packed_layout(I, H, O)
    p = jnp.zeros((rows, lanes), f32)
    p = p.at[r_wih:r_wih + I, :H].set(w_ih.astype(f32).T)
    p = p.at[r_whh:r_whh + H, :H].set(w_hh.astype(f32).T)
    p = p.at[r_b, :H].set((b_ih + b_hh).astype(f32))
    p = p.at[r_who:r_who + H, :O].set(w_ho.astype(f32).T)
    p = p.at[r_bo, :O].set(b_ho.astype(f32))
    return p


@functools.partial(jax.jit, static_argnums=(2, 3))
def char_rnn_forward(x, packed_params, hidden_size, output_size):
    """x: (T, B, I) float32.  Returns (B, O) float32 = Linear(RNN(x)[-1])."""
    f32 = jnp.float32
    T, B, I = x.shape
    H, O = hidden_size, output_size
    rows, lanes, r_wih, r_whh, r_b, r_who, r_bo = _packed_layout(I, H, O)

    # Pad batch to a full sublane group so every per-step tile is (8,128)-aligned.
    Bp = _round_up(max(B, 8), 8)
    x = x.astype(f32)
    if Bp != B:
        x = jnp.pad(x, ((0, 0), (0, Bp - B), (0, 0)))
    x2d = x.reshape(T * Bp, I)                     # time-major, flattened rows

    def kernel(x_ref, p_ref, out_ref):
        # Static carving of the packed parameter buffer (segment starts are
        # multiples of 8 sublanes; slices are free).
        wih_t = p_ref[r_wih:r_wih + I, :H]         # (I, H)
        whh_t = p_ref[r_whh:r_whh + H, :H]         # (H, H)
        b = p_ref[r_b:r_b + 1, :H]                 # (1, H)
        who_t = p_ref[r_who:r_who + H, :]          # (H, lanes)  lane-dense
        bo = p_ref[r_bo:r_bo + 1, :]               # (1, lanes)

        # Hoisted input projection: one f32 MXU call covering all T steps.
        pre_x = jnp.dot(x_ref[...], wih_t,
                        precision=lax.Precision.HIGHEST,
                        preferred_element_type=f32) + b        # (T*Bp, H)

        # Single-pass bf16 recurrence dot (explicit precision); cast of the
        # loop-invariant RHS happens once, off the serial chain.
        whh_bf = whh_t.astype(jnp.bfloat16)
        h = jnp.zeros((Bp, H), f32)
        for t in range(T):                         # fully unrolled; T static
            hh = jnp.dot(h.astype(jnp.bfloat16), whh_bf,
                         preferred_element_type=f32)
            h = jnp.tanh(pre_x[t * Bp:(t + 1) * Bp, :] + hh)

        # Final h -> o Linear; lane-dense (Bp, lanes) unmasked store.
        out_ref[...] = jnp.dot(h, who_t,
                               precision=lax.Precision.HIGHEST,
                               preferred_element_type=f32) + bo

    vmem = pltpu.MemorySpace.VMEM
    out = pl.pallas_call(
        kernel,
        out_shape=jax.ShapeDtypeStruct((Bp, lanes), f32),
        in_specs=[pl.BlockSpec(memory_space=vmem)] * 2,
        out_specs=pl.BlockSpec(memory_space=vmem),
    )(x2d, packed_params)

    return out[:B, :O]


def char_rnn_reference(x, w_ih, w_hh, b_ih, b_hh, w_ho, b_ho):
    """Pure-JAX fp32 reference matching nn.RNN(tanh) + Linear, h0 = 0."""
    hp = lax.Precision.HIGHEST
    T, B, _ = x.shape
    H = w_ih.shape[0]
    h = jnp.zeros((B, H), jnp.float32)
    for t in range(T):
        h = jnp.tanh(jnp.dot(x[t], w_ih.T, precision=hp) + b_ih
                     + jnp.dot(h, w_hh.T, precision=hp) + b_hh)
    return jnp.dot(h, w_ho.T, precision=hp) + b_ho


if __name__ == "__main__":
    # Small shapes consistent with the module's forward:
    #   x: (seq_len=8, batch=2, input_size=16), hidden=32, output=10
    T, B, I, H, O = 8, 2, 16, 32, 10

    key = jax.random.PRNGKey(0)
    kx, k1, k2, k3, k4, k5, k6 = jax.random.split(key, 7)

    # Deterministic parameter init (PyTorch-style uniform(-1/sqrt(H), 1/sqrt(H)))
    bound = 1.0 / jnp.sqrt(jnp.float32(H))
    x = jax.random.normal(kx, (T, B, I), jnp.float32)
    w_ih = jax.random.uniform(k1, (H, I), jnp.float32, -bound, bound)
    w_hh = jax.random.uniform(k2, (H, H), jnp.float32, -bound, bound)
    b_ih = jax.random.uniform(k3, (H,), jnp.float32, -bound, bound)
    b_hh = jax.random.uniform(k4, (H,), jnp.float32, -bound, bound)
    w_ho = jax.random.uniform(k5, (O, H), jnp.float32, -bound, bound)
    b_ho = jax.random.uniform(k6, (O,), jnp.float32, -bound, bound)

    # Weights are constants across inference calls: pack/transposes done once.
    packed = pack_char_rnn_params(w_ih, w_hh, b_ih, b_hh, w_ho, b_ho)

    out = char_rnn_forward(x, packed, H, O)
    out = jax.block_until_ready(out)

    ref = char_rnn_reference(x, w_ih, w_hh, b_ih, b_hh, w_ho, b_ho)
    assert out.shape == (B, O), out.shape
    # Recurrence matmul intentionally runs single-pass bf16 on the MXU (per the
    # performance review), so compare against the fp32 reference with a
    # correspondingly relaxed tolerance (~1% level differences expected).
    assert jnp.allclose(out, ref, atol=3e-2, rtol=3e-2), (out, ref)

    print("KERNEL_OK")
</pallas_src>

<mosaic_0001>
module attributes {stable_mosaic.version = 11 : i64} {
  func.func @kernel(%arg0: memref<64x16xf32, #tpu.memory_space<vmem>>, %arg1: memref<96x128xf32, #tpu.memory_space<vmem>>, %arg2: memref<8x128xf32, #tpu.memory_space<vmem>>) attributes {dimension_semantics = [], scalar_prefetch = 0 : i64, scratch_operands = 0 : i64, tpu.core_type = #tpu.core_type<tc>} {
    %c0 = arith.constant 0 : index
    %c0_0 = arith.constant 0 : index
    %0 = vector.load %arg1[%c0, %c0_0] : memref<96x128xf32, #tpu.memory_space<vmem>>, vector<16x32xf32>
    %c16 = arith.constant 16 : index
    %c0_1 = arith.constant 0 : index
    %1 = vector.load %arg1[%c16, %c0_1] : memref<96x128xf32, #tpu.memory_space<vmem>>, vector<32x32xf32>
    %c48 = arith.constant 48 : index
    %c0_2 = arith.constant 0 : index
    %2 = vector.load %arg1[%c48, %c0_2] : memref<96x128xf32, #tpu.memory_space<vmem>>, vector<1x32xf32>
    %c56 = arith.constant 56 : index
    %c0_3 = arith.constant 0 : index
    %3 = vector.load %arg1[%c56, %c0_3] : memref<96x128xf32, #tpu.memory_space<vmem>>, vector<32x128xf32>
    %c88 = arith.constant 88 : index
    %c0_4 = arith.constant 0 : index
    %4 = vector.load %arg1[%c88, %c0_4] : memref<96x128xf32, #tpu.memory_space<vmem>>, vector<1x128xf32>
    %c0_5 = arith.constant 0 : index
    %c0_6 = arith.constant 0 : index
    %5 = vector.load %arg0[%c0_5, %c0_6] : memref<64x16xf32, #tpu.memory_space<vmem>>, vector<64x16xf32>
    %cst = arith.constant dense<0.000000e+00> : vector<64x32xf32>
    %6 = tpu.matmul %5, %0, %cst {dimension_numbers = #tpu.dot_dimension_numbers<[1], [0], [0], [1], [0, 0, 1, 1], [], []>, precision = #tpu.contract_precision<fp32>} : vector<64x16xf32>, vector<16x32xf32>, vector<64x32xf32> -> vector<64x32xf32>
    %7 = vector.broadcast %2 : vector<1x32xf32> to vector<64x32xf32>
    %8 = arith.addf %6, %7 : vector<64x32xf32>
    %9 = arith.truncf %1 : vector<32x32xf32> to vector<32x32xbf16>
    %cst_7 = arith.constant 0.000000e+00 : f32
    %10 = vector.broadcast %cst_7 : f32 to vector<8x32xf32>
    %11 = arith.truncf %10 : vector<8x32xf32> to vector<8x32xbf16>
    %cst_8 = arith.constant dense<0.000000e+00> : vector<8x32xf32>
    %12 = tpu.matmul %11, %9, %cst_8 {dimension_numbers = #tpu.dot_dimension_numbers<[1], [0], [0], [1], [0, 0, 1, 1], [], []>} : vector<8x32xbf16>, vector<32x32xbf16>, vector<8x32xf32> -> vector<8x32xf32>
    %13 = vector.extract_strided_slice %8 {offsets = [0, 0], sizes = [8, 32], strides = [1, 1]} : vector<64x32xf32> to vector<8x32xf32>
    %14 = arith.addf %13, %12 : vector<8x32xf32>
    %15 = math.tanh %14 : vector<8x32xf32>
    %16 = arith.truncf %15 : vector<8x32xf32> to vector<8x32xbf16>
    %cst_9 = arith.constant dense<0.000000e+00> : vector<8x32xf32>
    %17 = tpu.matmul %16, %9, %cst_9 {dimension_numbers = #tpu.dot_dimension_numbers<[1], [0], [0], [1], [0, 0, 1, 1], [], []>} : vector<8x32xbf16>, vector<32x32xbf16>, vector<8x32xf32> -> vector<8x32xf32>
    %18 = vector.extract_strided_slice %8 {offsets = [8, 0], sizes = [8, 32], strides = [1, 1]} : vector<64x32xf32> to vector<8x32xf32>
    %19 = arith.addf %18, %17 : vector<8x32xf32>
    %20 = math.tanh %19 : vector<8x32xf32>
    %21 = arith.truncf %20 : vector<8x32xf32> to vector<8x32xbf16>
    %cst_10 = arith.constant dense<0.000000e+00> : vector<8x32xf32>
    %22 = tpu.matmul %21, %9, %cst_10 {dimension_numbers = #tpu.dot_dimension_numbers<[1], [0], [0], [1], [0, 0, 1, 1], [], []>} : vector<8x32xbf16>, vector<32x32xbf16>, vector<8x32xf32> -> vector<8x32xf32>
    %23 = vector.extract_strided_slice %8 {offsets = [16, 0], sizes = [8, 32], strides = [1, 1]} : vector<64x32xf32> to vector<8x32xf32>
    %24 = arith.addf %23, %22 : vector<8x32xf32>
    %25 = math.tanh %24 : vector<8x32xf32>
    %26 = arith.truncf %25 : vector<8x32xf32> to vector<8x32xbf16>
    %cst_11 = arith.constant dense<0.000000e+00> : vector<8x32xf32>
    %27 = tpu.matmul %26, %9, %cst_11 {dimension_numbers = #tpu.dot_dimension_numbers<[1], [0], [0], [1], [0, 0, 1, 1], [], []>} : vector<8x32xbf16>, vector<32x32xbf16>, vector<8x32xf32> -> vector<8x32xf32>
    %28 = vector.extract_strided_slice %8 {offsets = [24, 0], sizes = [8, 32], strides = [1, 1]} : vector<64x32xf32> to vector<8x32xf32>
    %29 = arith.addf %28, %27 : vector<8x32xf32>
    %30 = math.tanh %29 : vector<8x32xf32>
    %31 = arith.truncf %30 : vector<8x32xf32> to vector<8x32xbf16>
    %cst_12 = arith.constant dense<0.000000e+00> : vector<8x32xf32>
    %32 = tpu.matmul %31, %9, %cst_12 {dimension_numbers = #tpu.dot_dimension_numbers<[1], [0], [0], [1], [0, 0, 1, 1], [], []>} : vector<8x32xbf16>, vector<32x32xbf16>, vector<8x32xf32> -> vector<8x32xf32>
    %33 = vector.extract_strided_slice %8 {offsets = [32, 0], sizes = [8, 32], strides = [1, 1]} : vector<64x32xf32> to vector<8x32xf32>
    %34 = arith.addf %33, %32 : vector<8x32xf32>
    %35 = math.tanh %34 : vector<8x32xf32>
    %36 = arith.truncf %35 : vector<8x32xf32> to vector<8x32xbf16>
    %cst_13 = arith.constant dense<0.000000e+00> : vector<8x32xf32>
    %37 = tpu.matmul %36, %9, %cst_13 {dimension_numbers = #tpu.dot_dimension_numbers<[1], [0], [0], [1], [0, 0, 1, 1], [], []>} : vector<8x32xbf16>, vector<32x32xbf16>, vector<8x32xf32> -> vector<8x32xf32>
    %38 = vector.extract_strided_slice %8 {offsets = [40, 0], sizes = [8, 32], strides = [1, 1]} : vector<64x32xf32> to vector<8x32xf32>
    %39 = arith.addf %38, %37 : vector<8x32xf32>
    %40 = math.tanh %39 : vector<8x32xf32>
    %41 = arith.truncf %40 : vector<8x32xf32> to vector<8x32xbf16>
    %cst_14 = arith.constant dense<0.000000e+00> : vector<8x32xf32>
    %42 = tpu.matmul %41, %9, %cst_14 {dimension_numbers = #tpu.dot_dimension_numbers<[1], [0], [0], [1], [0, 0, 1, 1], [], []>} : vector<8x32xbf16>, vector<32x32xbf16>, vector<8x32xf32> -> vector<8x32xf32>
    %43 = vector.extract_strided_slice %8 {offsets = [48, 0], sizes = [8, 32], strides = [1, 1]} : vector<64x32xf32> to vector<8x32xf32>
    %44 = arith.addf %43, %42 : vector<8x32xf32>
    %45 = math.tanh %44 : vector<8x32xf32>
    %46 = arith.truncf %45 : vector<8x32xf32> to vector<8x32xbf16>
    %cst_15 = arith.constant dense<0.000000e+00> : vector<8x32xf32>
    %47 = tpu.matmul %46, %9, %cst_15 {dimension_numbers = #tpu.dot_dimension_numbers<[1], [0], [0], [1], [0, 0, 1, 1], [], []>} : vector<8x32xbf16>, vector<32x32xbf16>, vector<8x32xf32> -> vector<8x32xf32>
    %48 = vector.extract_strided_slice %8 {offsets = [56, 0], sizes = [8, 32], strides = [1, 1]} : vector<64x32xf32> to vector<8x32xf32>
    %49 = arith.addf %48, %47 : vector<8x32xf32>
    %50 = math.tanh %49 : vector<8x32xf32>
    %cst_16 = arith.constant dense<0.000000e+00> : vector<8x128xf32>
    %51 = tpu.matmul %50, %3, %cst_16 {dimension_numbers = #tpu.dot_dimension_numbers<[1], [0], [0], [1], [0, 0, 1, 1], [], []>, precision = #tpu.contract_precision<fp32>} : vector<8x32xf32>, vector<32x128xf32>, vector<8x128xf32> -> vector<8x128xf32>
    %52 = vector.broadcast %4 : vector<1x128xf32> to vector<8x128xf32>
    %53 = arith.addf %51, %52 : vector<8x128xf32>
    %c0_17 = arith.constant 0 : index
    %c0_18 = arith.constant 0 : index
    %54 = vector.load %arg2[%c0_17, %c0_18] : memref<8x128xf32, #tpu.memory_space<vmem>>, vector<8x128xf32>
    tpu.vector_store %arg2[%c0_17, %c0_18], %53 {strides = array<i32>} : memref<8x128xf32, #tpu.memory_space<vmem>>, vector<8x128xf32>,
    return
  }
}

</mosaic_0001>

<bundles_post_ra>
// kernel: char_rnn_forward.1
= control target key start
LH: loop header
LB: loop body
LE: loop exit
PB: predicated region body
PF: predicated region fallthrough
CT: control target
= control target key end

     0   :  { %7 = vsyncpa [#allocation3], 0  ;;  %s854_s12 = smov [#allocation2]   ;;  %s855_s14 = smov 128   ;;  %s990_s0 = inlined_call_operand.vmem [shape: f32[64,16], index: 0, kind: input, shape index: {}]   ;;  %s991_s1 = inlined_call_operand.hbm [shape: f32[96,128], index: 1, kind: input, shape index: {}]   ;;  %s992_s2 = inlined_call_operand.vmem [shape: f32[8,128], index: 2, kind: output, shape index: {}]  }
   0x1   :  { %s14_s11 = sshll.u32 %s991_s1, 4  ;;  %s16_s13 = sshll.u32 %s854_s12, 4  ;;  %s15_s11 = int_to_ptr.hbm [resolvable:$true] %s14_s11  ;;  %s17_s13 = int_to_ptr.vmem [resolvable:$true] %s16_s13 }
   0x2   :  { %s856_s15 = smov 8  }
   0x3   :  { %22 = dma.hbm_to_vmem [thread:$0]  %s15_s11, 1536, %s17_s13, [#allocation3], %s855_s14, %s855_s14, %s856_s15  }
   0x4   :  { %852 = dma.done.wait [#allocation3], 1536  }
   0x5   :  { %853 = vsyncadd [#allocation3], 4294965760  ;;  %vm49_vm0 = vcmask 130048   ;;  %v29_v0 = vld [vmem:[#allocation2 + $0x8] sm:$0xff]  ;;  %v28_v1 = vld [vmem:[#allocation2] sm:$0xff]  ;;  %vm452_vm1 = vcmask 261120  }
   0x6   :  { %v40_v2 = vld [vmem:[%s990_s0] sm:$0xff]  ;;  %v88_v3 = vand.u32 4294901760, %v29_v0  ;;  %v90_v4 = vand.u32 4294901760, %v28_v1  ;;  %v33_v7 = vld [vmem:[#allocation2 + $0x28] sm:$0xff]  ;;  %v42_v11 = vld [vmem:[%s990_s0 + $0x10] sm:$0xff] }
   0x7   :  { %v51_v5 = vsel %vm49_vm0, %v40_v2, 0  ;;  %v32_v6 = vld [vmem:[#allocation2 + $0x20] sm:$0xff]  ;;  %v41_v8 = vld [vmem:[%s990_s0 + $0x8] sm:$0xff]  ;;  %v57_v20 = vsel %vm49_vm0, %v42_v11, 0  ;;  %v30_v27 = vld [vmem:[#allocation2 + $0x10] sm:$0xff]  ;;  %v857_v11 = vmov 0  }
   0x8   :  { %v883_v9 = vand.u32 4294901760, %v51_v5  ;;  %v54_v10 = vsel %vm49_vm0, %v41_v8, 0  ;;  %v172_v12 = vsub.f32 %v29_v0, %v88_v3  ;;  %v178_v13 = vsub.f32 %v28_v1, %v90_v4  ;;  %89 = vmatpush.msra.mxu0 %v88_v3  ;;  %292 = vmatpush.msra.mxu3 %v88_v3  ;;  %v31_v28 = vld [vmem:[#allocation2 + $0x18] sm:$0xff]  ;;  %v44_v40 = vld [vmem:[%s990_s0 + $0x20] sm:$0xff]  ;;  %v45_v47 = vld [vmem:[%s990_s0 + $0x28] sm:$0xff] }
   0x9   :  { %v889_v14 = vand.u32 4294901760, %v54_v10  ;;  %v892_v16 = vpack.c.bf16 %v33_v7, %v32_v6  ;;  %v896_v26 = vand.u32 4294901760, %v57_v20  ;;  %v43_v32 = vld [vmem:[%s990_s0 + $0x18] sm:$0xff]  ;;  %v902_v33 = vpack.c.bf16 %v31_v28, %v30_v27  ;;  %v46_v54 = vld [vmem:[%s990_s0 + $0x30] sm:$0xff] }
   0xa   :  { %v93_v15 = vsub.f32 %v51_v5, %v883_v9  ;;  %232 = vmatpush.msra.mxu2 %v172_v12  ;;  %91 = vmatpush.msra.mxu0 %v90_v4  ;;  %v173_v17 = vand.u32 4294901760, %v172_v12  ;;  %v179_v18 = vand.u32 4294901760, %v178_v13  ;;  %v60_v36 = vsel %vm49_vm0, %v43_v32, 0  ;;  %v47_v61 = vld [vmem:[%s990_s0 + $0x38] sm:$0xff] }
   0xb   :  { %v101_v19 = vsub.f32 %v54_v10, %v889_v14  ;;  %294 = vmatpush.msra.mxu3 %v90_v4  ;;  %v109_v35 = vsub.f32 %v57_v20, %v896_v26  ;;  %v911_v39 = vand.u32 4294901760, %v60_v36  ;;  %v63_v43 = vsel %vm49_vm0, %v44_v40, 0 }
   0xc   :  { %v94_v21 = vand.u32 4294901760, %v93_v15  ;;  %235 = vmatpush.msra.mxu2 %v178_v13  ;;  %v174_v22 = vsub.f32 %v172_v12, %v173_v17  ;;  %361 = vmatpush.msrb.mxu0 %v173_v17  ;;  %v180_v23 = vsub.f32 %v178_v13, %v179_v18  ;;  %v124_v46 = vand.u32 4294901760, %v63_v43 }
   0xd   :  { %238 = vmatmul.f32.vlgmr.msra.gmra.mxu2 %v93_v15  ;;  %v102_v25 = vand.u32 4294901760, %v101_v19  ;;  %481 = vmatpush.bf16.msrb.mxu3 %v892_v16  ;;  %v110_v38 = vand.u32 4294901760, %v109_v35  ;;  %v117_v42 = vsub.f32 %v60_v36, %v911_v39  ;;  %v66_v50 = vsel %vm49_vm0, %v45_v47, 0 }
   0xe   :  { %v95_v24 = vsub.f32 %v93_v15, %v94_v21  ;;  %298 = vmatmul.f32.vlgmr.msra.gmra.mxu3 %v94_v21  ;;  %462 = vmatpush.bf16.msrb.mxu2 %v892_v16  ;;  %v175_v29 = vand.u32 4294901760, %v174_v22  ;;  %v181_v30 = vand.u32 4294901760, %v180_v23  ;;  %v125_v49 = vsub.f32 %v63_v43, %v124_v46  ;;  %v810_v15 = vld [vmem:[#allocation2 + $0x30] ss:$0 sm:$0xff] }
   0xf   :  { %365 = vmatpush.msrb.mxu0 %v179_v18  ;;  %v103_v34 = vsub.f32 %v101_v19, %v102_v25  ;;  %v111_v41 = vsub.f32 %v109_v35, %v110_v38  ;;  %v118_v45 = vand.u32 4294901760, %v117_v42  ;;  %v132_v53 = vand.u32 4294901760, %v66_v50 }
  0x10   :  { %v96_v31 = vand.u32 4294901760, %v95_v24  ;;  %176 = vmatpush.msra.mxu1 %v175_v29  ;;  %v126_v52 = vand.u32 4294901760, %v125_v49  ;;  %v69_v57 = vsel %vm49_vm0, %v46_v54, 0  ;;  %v72_v0 = vsel %vm49_vm0, %v47_v61, 0 }
  0x11   :  { %482 = vmatpush.bf16.msrb.mxu3 %v902_v33  ;;  %v104_v37 = vand.u32 4294901760, %v103_v34  ;;  %v112_v44 = vand.u32 4294901760, %v111_v41  ;;  %v119_v48 = vsub.f32 %v117_v42, %v118_v45  ;;  %v133_v56 = vsub.f32 %v66_v50, %v132_v53 }
  0x12   :  { %97 = vmatmul.f32.vlgmr.msra.gmra.mxu0 %v96_v31  ;;  %182 = vmatpush.msra.mxu1 %v181_v30  ;;  %v127_v55 = vsub.f32 %v125_v49, %v126_v52  ;;  %v140_v60 = vand.u32 4294901760, %v69_v57 }
  0x13   :  { %463 = vmatpush.bf16.msrb.mxu2 %v902_v33  ;;  %184 = vmatmul.f32.vlgmr.msra.gmra.mxu1 %v883_v9  ;;  %v120_v51 = vand.u32 4294901760, %v119_v48  ;;  %v134_v59 = vand.u32 4294901760, %v133_v56 }
  0x14   :  { %414 = vmatpush.msrb.mxu1 %v88_v3  ;;  %v128_v58 = vand.u32 4294901760, %v127_v55  ;;  %v141_v63 = vsub.f32 %v69_v57, %v140_v60  ;;  %v148_v3 = vand.u32 4294901760, %v72_v0 }
  0x15   :  { %243 = vmatmul.f32.gmra.mxu2 %v101_v19  ;;  %519 = vmatpush.bf16.msra.mxu3 %v892_v16  ;;  %v135_v62 = vsub.f32 %v133_v56, %v134_v59 }
  0x16   :  { %304 = vmatmul.f32.gmra.mxu3 %v102_v25  ;;  %416 = vmatpush.msrb.mxu1 %v90_v4  ;;  %v142_v2 = vand.u32 4294901760, %v141_v63  ;;  %v149_v5 = vsub.f32 %v72_v0, %v148_v3 }
  0x17   :  { %500 = vmatpush.bf16.msra.mxu2 %v892_v16  ;;  %v136_v1 = vand.u32 4294901760, %v135_v62 }
  0x18   :  { %v143_v4 = vsub.f32 %v141_v63, %v142_v2  ;;  %v150_v7 = vand.u32 4294901760, %v149_v5 }
  0x19   :  { %520 = vmatpush.bf16.msra.mxu3 %v902_v33 }
  0x1a   :  { %105 = vmatmul.f32.gmra.mxu0 %v104_v37  ;;  %v144_v6 = vand.u32 4294901760, %v143_v4  ;;  %v151_v8 = vsub.f32 %v149_v5, %v150_v7 }
  0x1b   :  { %501 = vmatpush.bf16.msra.mxu2 %v902_v33  ;;  %188 = vmatmul.f32.gmra.mxu1 %v889_v14 }
  0x1c   :  { %v152_v10 = vand.u32 4294901760, %v151_v8 }
  0x1d   :  { %248 = vmatmul.f32.gmra.mxu2 %v109_v35 }
  0x1e   :  { %310 = vmatmul.f32.gmra.mxu3 %v110_v38 }
  0x22   :  { %113 = vmatmul.f32.gmra.mxu0 %v112_v44 }
  0x23   :  { %192 = vmatmul.f32.gmra.mxu1 %v896_v26 }
  0x25   :  { %253 = vmatmul.f32.gmra.mxu2 %v117_v42 }
  0x26   :  { %316 = vmatmul.f32.gmra.mxu3 %v118_v45 }
  0x2a   :  { %121 = vmatmul.f32.gmra.mxu0 %v120_v51 }
  0x2b   :  { %196 = vmatmul.f32.gmra.mxu1 %v911_v39 }
  0x2d   :  { %258 = vmatmul.f32.gmra.mxu2 %v125_v49 }
  0x2e   :  { %322 = vmatmul.f32.gmra.mxu3 %v126_v52 }
  0x32   :  { %129 = vmatmul.f32.gmra.mxu0 %v128_v58 }
  0x33   :  { %200 = vmatmul.f32.gmra.mxu1 %v124_v46 }
  0x35   :  { %263 = vmatmul.f32.gmra.mxu2 %v133_v56 }
  0x36   :  { %328 = vmatmul.f32.gmra.mxu3 %v134_v59 }
  0x3a   :  { %137 = vmatmul.f32.gmra.mxu0 %v136_v1 }
  0x3b   :  { %204 = vmatmul.f32.gmra.mxu1 %v132_v53 }
  0x3d   :  { %268 = vmatmul.f32.gmra.mxu2 %v141_v63 }
  0x3e   :  { %334 = vmatmul.f32.gmra.mxu3 %v142_v2 }
  0x42   :  { %145 = vmatmul.f32.gmra.mxu0 %v144_v6 }
  0x43   :  { %208 = vmatmul.f32.gmra.mxu1 %v140_v60 }
  0x45   :  { %273 = vmatmul.f32.gmra.mxu2 %v149_v5 }
  0x46   :  { %340 = vmatmul.f32.gmra.mxu3 %v150_v7 }
  0x4a   :  { %153 = vmatmul.f32.gmra.mxu0 %v152_v10 }
  0x4b   :  { %212 = vmatmul.f32.gmra.mxu1 %v148_v3 }
  0x4d   :  { %464 = vmatmul.bf16.vlgmr.msrb.gmra.mxu2 %v857_v11 }
  0x4e   :  { %538 = vmatpush.bf16.msrb.mxu2 %v892_v16 }
  0x52   :  { %367 = vmatmul.f32.vlgmr.msrb.gmra.mxu0 %v883_v9  ;;  %539 = vmatpush.bf16.msrb.mxu2 %v902_v33 }
  0x53   :  { %418 = vmatmul.f32.vlgmr.msrb.gmra.mxu1 %v883_v9 }
  0x5a   :  { %371 = vmatmul.f32.gmra.mxu0 %v889_v14 }
  0x5b   :  { %422 = vmatmul.f32.gmra.mxu1 %v889_v14 }
  0x62   :  { %375 = vmatmul.f32.gmra.mxu0 %v896_v26 }
  0x63   :  { %426 = vmatmul.f32.gmra.mxu1 %v896_v26 }
  0x6a   :  { %379 = vmatmul.f32.gmra.mxu0 %v911_v39 }
  0x6b   :  { %430 = vmatmul.f32.gmra.mxu1 %v911_v39 }
  0x72   :  { %383 = vmatmul.f32.gmra.mxu0 %v124_v46 }
  0x73   :  { %434 = vmatmul.f32.gmra.mxu1 %v124_v46 }
  0x7a   :  { %387 = vmatmul.f32.gmra.mxu0 %v132_v53 }
  0x7b   :  { %438 = vmatmul.f32.gmra.mxu1 %v132_v53 }
  0x82   :  { %391 = vmatmul.f32.gmra.mxu0 %v140_v60 }
  0x83   :  { %442 = vmatmul.f32.gmra.mxu1 %v140_v60 }
  0x8a   :  { %395 = vmatmul.f32.gmra.mxu0 %v148_v3 }
  0x8b   :  { %446 = vmatmul.f32.gmra.mxu1 %v148_v3 }
  0x8f   :  { %v98_v9 = vpop.f32.mrf.mxu0 }
  0x90   :  { %v185_v12 = vpop.f32.mrf.mxu1  ;;  %v239_v13 = vpop.f32.mrf.mxu2  ;;  %v99_v61 = vadd.f32 %v810_v15, %v98_v9 }
  0x91   :  { %v299_v14 = vpop.f32.mrf.mxu3 }
  0x92   :  { %v186_v1 = vadd.f32 %v185_v12, %v99_v61 }
  0x94   :  { %v240_v7 = vadd.f32 %v239_v13, %v186_v1 }
  0x96   :  { %v300_v11 = vadd.f32 %v299_v14, %v240_v7  ;;  %v36_v7 = vld [vmem:[#allocation2 + $0x40] sm:$0xff] }
  0x97   :  { %v106_v17 = vpop.f32.mrf.mxu0 }
  0x98   :  { %v107_v18 = vadd.f32 %v810_v15, %v106_v17  ;;  %v189_v19 = vpop.f32.mrf.mxu1  ;;  %v244_v20 = vpop.f32.mrf.mxu2 }
  0x99   :  { %v946_v22 = vpop.f32.mrf.mxu3 }
  0x9a   :  { %v190_v21 = vadd.f32 %v189_v19, %v107_v18 }
  0x9c   :  { %v948_v23 = vadd.f32 %v244_v20, %v190_v21 }
  0x9f   :  { %v114_v24 = vpop.f32.mrf.mxu0 }
  0xa0   :  { %v115_v25 = vadd.f32 %v810_v15, %v114_v24  ;;  %v193_v26 = vpop.f32.mrf.mxu1  ;;  %v249_v27 = vpop.f32.mrf.mxu2 }
  0xa1   :  { %v311_v29 = vpop.f32.mrf.mxu3 }
  0xa2   :  { %v194_v28 = vadd.f32 %v193_v26, %v115_v25 }
  0xa4   :  { %v250_v30 = vadd.f32 %v249_v27, %v194_v28 }
  0xa6   :  { %v950_v31 = vadd.f32 %v311_v29, %v250_v30 }
  0xa7   :  { %v122_v32 = vpop.f32.mrf.mxu0 }
  0xa8   :  { %v123_v34 = vadd.f32 %v810_v15, %v122_v32  ;;  %v197_v35 = vpop.f32.mrf.mxu1  ;;  %v254_v36 = vpop.f32.mrf.mxu2 }
  0xa9   :  { %v317_v38 = vpop.f32.mrf.mxu3 }
  0xaa   :  { %v198_v37 = vadd.f32 %v197_v35, %v123_v34 }
  0xac   :  { %v255_v39 = vadd.f32 %v254_v36, %v198_v37 }
  0xae   :  { %v952_v40 = vadd.f32 %v317_v38, %v255_v39 }
  0xaf   :  { %v130_v41 = vpop.f32.mrf.mxu0 }
  0xb0   :  { %v131_v42 = vadd.f32 %v810_v15, %v130_v41  ;;  %v201_v43 = vpop.f32.mrf.mxu1  ;;  %v259_v44 = vpop.f32.mrf.mxu2 }
  0xb1   :  { %v323_v46 = vpop.f32.mrf.mxu3 }
  0xb2   :  { %v202_v45 = vadd.f32 %v201_v43, %v131_v42 }
  0xb4   :  { %v260_v47 = vadd.f32 %v259_v44, %v202_v45 }
  0xb6   :  { %v954_v48 = vadd.f32 %v323_v46, %v260_v47 }
  0xb7   :  { %v138_v49 = vpop.f32.mrf.mxu0 }
  0xb8   :  { %v139_v50 = vadd.f32 %v810_v15, %v138_v49  ;;  %v205_v51 = vpop.f32.mrf.mxu1  ;;  %v264_v52 = vpop.f32.mrf.mxu2 }
  0xb9   :  { %v329_v54 = vpop.f32.mrf.mxu3 }
  0xba   :  { %v206_v53 = vadd.f32 %v205_v51, %v139_v50 }
  0xbc   :  { %v265_v55 = vadd.f32 %v264_v52, %v206_v53 }
  0xbe   :  { %v956_v56 = vadd.f32 %v329_v54, %v265_v55 }
  0xbf   :  { %v146_v57 = vpop.f32.mrf.mxu0 }
  0xc0   :  { %v147_v58 = vadd.f32 %v810_v15, %v146_v57  ;;  %v209_v59 = vpop.f32.mrf.mxu1  ;;  %v269_v60 = vpop.f32.mrf.mxu2 }
  0xc1   :  { %v335_v63 = vpop.f32.mrf.mxu3 }
  0xc2   :  { %v210_v62 = vadd.f32 %v209_v59, %v147_v58 }
  0xc4   :  { %v270_v0 = vadd.f32 %v269_v60, %v210_v62 }
  0xc6   :  { %v958_v2 = vadd.f32 %v335_v63, %v270_v0 }
  0xc7   :  { %v154_v3 = vpop.f32.mrf.mxu0 }
  0xc8   :  { %v155_v4 = vadd.f32 %v810_v15, %v154_v3  ;;  %v213_v5 = vpop.f32.mrf.mxu1  ;;  %v274_v6 = vpop.f32.mrf.mxu2  ;;  %v306_v15 = vadd.f32 %v946_v22, %v948_v23 }
  0xc9   :  { %v965_v13 = vpop.f32.mrf.mxu3 }
  0xca   :  { %v214_v8 = vadd.f32 %v213_v5, %v155_v4  ;;  %v38_v5 = vld [vmem:[#allocation2 + $0x50] sm:$0xff] }
  0xcc   :  { %v960_v10 = vadd.f32 %v274_v6, %v214_v8  ;;  %v37_v6 = vld [vmem:[#allocation2 + $0x48] sm:$0xff]  ;;  %v620_v8 = vand.u32 4294901760, %v38_v5 }
  0xce   :  { %621 = vmatpush.msra.mxu0 %v620_v8 }
  0xcf   :  { %v368_v17 = vpop.f32.mrf.mxu0 }
  0xd0   :  { %v369_v18 = vadd.f32 %v368_v17, %v300_v11  ;;  %v419_v19 = vpop.f32.mrf.mxu1  ;;  %v465_v20 = vpop.f32.mrf.mxu2  ;;  %v622_v11 = vand.u32 4294901760, %v37_v6  ;;  %v624_v17 = vand.u32 4294901760, %v36_v7 }
  0xd2   :  { %v420_v9 = vadd.f32 %v419_v19, %v369_v18  ;;  %v650_v18 = vsub.f32 %v38_v5, %v620_v8  ;;  %v656_v19 = vsub.f32 %v37_v6, %v622_v11  ;;  %623 = vmatpush.msra.mxu0 %v622_v11 }
  0xd4   :  { %v469_v21 = vadd.f32 %v465_v20, %v420_v9  ;;  %v651_v20 = vand.u32 4294901760, %v650_v18  ;;  %v657_v9 = vand.u32 4294901760, %v656_v19  ;;  %625 = vmatpush.msra.mxu0 %v624_v17 }
  0xd6   :  { %812 = vtanh.f32 %v469_v21 }
  0xd7   :  { %v372_v14 = vpop.f32.mrf.mxu0 }
  0xd8   :  { %v467_v24 = vpop.f32.mrf.mxu2  ;;  %v373_v26 = vadd.f32 %v372_v14, %v306_v15  ;;  %v423_v27 = vpop.f32.mrf.mxu1 }
  0xd9   :  { %v652_v24 = vsub.f32 %v650_v18, %v651_v20 }
  0xda   :  { %v424_v28 = vadd.f32 %v423_v27, %v373_v26 }
  0xdb   :  { %v653_v14 = vand.u32 4294901760, %v652_v24 }
  0xdc   :  { %v813_v12 = vpop.eup %812 }
  0xdd   :  { %v471_v25 = vpack.c.bf16 %v813_v12, %v813_v12  ;;  %v658_v12 = vsub.f32 %v656_v19, %v657_v9  ;;  %654 = vmatpush.msra.mxu1 %v653_v14 }
  0xdf   :  { %799 = vmatmul.msk.bf16.vlgmr.msrb.gmra.mxu3 %vm452_vm1, %v471_v25  ;;  %v376_v36 = vpop.f32.mrf.mxu0  ;;  %v659_v15 = vand.u32 4294901760, %v658_v12 }
  0xe0   :  { %557 = vmatpush.bf16.msrb.mxu3 %v892_v16  ;;  %v377_v37 = vadd.f32 %v376_v36, %v950_v31  ;;  %v427_v38 = vpop.f32.mrf.mxu1 }
  0xe1   :  { %660 = vmatpush.msra.mxu1 %v659_v15 }
  0xe2   :  { %v428_v22 = vadd.f32 %v427_v38, %v377_v37  ;;  %v35_v38 = vld [vmem:[#allocation2 + $0x38] sm:$0xff] }
  0xe4   :  { %558 = vmatpush.bf16.msrb.mxu3 %v902_v33 }
  0xe7   :  { %v380_v44 = vpop.f32.mrf.mxu0 }
  0xe8   :  { %v381_v45 = vadd.f32 %v380_v44, %v952_v40  ;;  %v431_v46 = vpop.f32.mrf.mxu1 }
  0xea   :  { %v432_v47 = vadd.f32 %v431_v46, %v381_v45 }
  0xef   :  { %v384_v53 = vpop.f32.mrf.mxu0 }
  0xf0   :  { %v385_v54 = vadd.f32 %v384_v53, %v954_v48  ;;  %v435_v55 = vpop.f32.mrf.mxu1 }
  0xf7   :  { %v388_v60 = vpop.f32.mrf.mxu0 }
  0xf8   :  { %v389_v61 = vadd.f32 %v388_v60, %v956_v56  ;;  %v439_v62 = vpop.f32.mrf.mxu1  ;;  %v662_v56 = vsub.f32 %v36_v7, %v624_v17 }
  0xfa   :  { %v440_v63 = vadd.f32 %v439_v62, %v389_v61  ;;  %v663_v21 = vand.u32 4294901760, %v662_v56 }
  0xfc   :  { %v664_v25 = vsub.f32 %v662_v56, %v663_v21 }
  0xfe   :  { %v665_v26 = vand.u32 4294901760, %v664_v25 }
  0xff   :  { %v392_v27 = vpop.f32.mrf.mxu0 }
 0x100   :  { %666 = vmatpush.msra.mxu1 %v665_v26 }
 0x162   :  { %v484_v29 = vpop.f32.mrf.mxu3 }
 0x163   :  { %v488_v30 = vadd.f32 %v484_v29, %v424_v28  ;;  %v393_v28 = vadd.f32 %v392_v27, %v958_v2  ;;  %v443_v29 = vpop.f32.mrf.mxu1 }
 0x165   :  { %814 = vtanh.f32 %v488_v30  ;;  %v444_v30 = vadd.f32 %v443_v29, %v393_v28 }
 0x16a   :  { %v486_v32 = vpop.f32.mrf.mxu3 }
 0x16b   :  { %v815_v34 = vpop.eup %814  ;;  %v447_v45 = vpop.f32.mrf.mxu1 }
 0x16c   :  { %v490_v35 = vpack.c.bf16 %v815_v34, %v815_v34 }
 0x16e   :  { %800 = vmatmul.msk.bf16.vlgmr.msra.gmra.mxu2 %vm452_vm1, %v490_v35 }
 0x16f   :  { %576 = vmatpush.bf16.msra.mxu2 %v892_v16 }
 0x173   :  { %577 = vmatpush.bf16.msra.mxu2 %v902_v33 }
 0x1f1   :  { %v503_v23 = vpop.f32.mrf.mxu2 }
 0x1f2   :  { %v507_v39 = vadd.f32 %v503_v23, %v428_v22  ;;  %v626_v22 = vand.u32 4294901760, %v35_v38 }
 0x1f4   :  { %816 = vtanh.f32 %v507_v39  ;;  %627 = vmatpush.msra.mxu0 %v626_v22  ;;  %v668_v23 = vsub.f32 %v35_v38, %v626_v22 }
 0x1f6   :  { %750 = vmatpush.msrb.mxu0 %v651_v20  ;;  %v669_v39 = vand.u32 4294901760, %v668_v23 }
 0x1f8   :  { %754 = vmatpush.msrb.mxu0 %v657_v9  ;;  %v670_v2 = vsub.f32 %v668_v23, %v669_v39 }
 0x1f9   :  { %v505_v41 = vpop.f32.mrf.mxu2 }
 0x1fa   :  { %v817_v42 = vpop.eup %816  ;;  %758 = vmatpush.msrb.mxu0 %v663_v21  ;;  %v671_v41 = vand.u32 4294901760, %v670_v2 }
 0x1fb   :  { %v509_v43 = vpack.c.bf16 %v817_v42, %v817_v42  ;;  %v396_v42 = vpop.f32.mrf.mxu0 }
 0x1fc   :  { %762 = vmatpush.msrb.mxu0 %v669_v39  ;;  %672 = vmatpush.msra.mxu1 %v671_v41 }
 0x1fd   :  { %801 = vmatmul.msk.bf16.vlgmr.msra.gmra.mxu3 %vm452_vm1, %v509_v43  ;;  %v342_v43 = vadd.f32 %v965_v13, %v960_v10  ;;  %v811_v10 = vld [vmem:[#allocation2 + $0x58] ss:$0 sm:$0xff] }
 0x1fe   :  { %595 = vmatpush.bf16.msra.mxu3 %v892_v16  ;;  %v436_v16 = vadd.f32 %v435_v55, %v385_v54  ;;  %781 = vmatpush.msrb.mxu1 %v620_v8 }
 0x1ff   :  { %v397_v44 = vadd.f32 %v396_v42, %v342_v43 }
 0x200   :  { %783 = vmatpush.msrb.mxu1 %v622_v11 }
 0x201   :  { %v448_v46 = vadd.f32 %v447_v45, %v397_v44 }
 0x202   :  { %596 = vmatpush.bf16.msra.mxu3 %v902_v33  ;;  %785 = vmatpush.msrb.mxu1 %v624_v17 }
 0x204   :  { %787 = vmatpush.msrb.mxu1 %v626_v22 }
 0x280   :  { %v522_v31 = vpop.f32.mrf.mxu3 }
 0x281   :  { %v526_v49 = vadd.f32 %v522_v31, %v432_v47 }
 0x283   :  { %818 = vtanh.f32 %v526_v49 }
 0x288   :  { %v524_v50 = vpop.f32.mrf.mxu3 }
 0x289   :  { %v819_v51 = vpop.eup %818 }
 0x28a   :  { %v528_v52 = vpack.c.bf16 %v819_v51, %v819_v51 }
 0x28c   :  { %802 = vmatmul.msk.bf16.vlgmr.msrb.gmra.mxu2 %vm452_vm1, %v528_v52 }
 0x28d   :  { %692 = vmatpush.msrb.mxu2 %v650_v18 }
 0x28f   :  { %695 = vmatpush.msrb.mxu2 %v656_v19 }
 0x291   :  { %698 = vmatpush.msrb.mxu2 %v662_v56 }
 0x293   :  { %701 = vmatpush.msrb.mxu2 %v668_v23 }
 0x30f   :  { %v541_v57 = vpop.f32.mrf.mxu2 }
 0x310   :  { %v545_v33 = vadd.f32 %v541_v57, %v436_v16 }
 0x312   :  { %820 = vtanh.f32 %v545_v33 }
 0x317   :  { %v543_v58 = vpop.f32.mrf.mxu2 }
 0x318   :  { %v821_v40 = vpop.eup %820 }
 0x319   :  { %v547_v59 = vpack.c.bf16 %v821_v40, %v821_v40 }
 0x31b   :  { %803 = vmatmul.msk.bf16.vlgmr.msrb.gmra.mxu3 %vm452_vm1, %v547_v59 }
 0x31c   :  { %721 = vmatpush.msrb.mxu3 %v620_v8 }
 0x31e   :  { %723 = vmatpush.msrb.mxu3 %v622_v11 }
 0x320   :  { %725 = vmatpush.msrb.mxu3 %v624_v17 }
 0x322   :  { %727 = vmatpush.msrb.mxu3 %v626_v22 }
 0x39e   :  { %v560_v0 = vpop.f32.mrf.mxu3 }
 0x39f   :  { %v564_v1 = vadd.f32 %v560_v0, %v440_v63 }
 0x3a1   :  { %822 = vtanh.f32 %v564_v1 }
 0x3a6   :  { %v562_v3 = vpop.f32.mrf.mxu3 }
 0x3a7   :  { %v823_v48 = vpop.eup %822 }
 0x3a8   :  { %v566_v4 = vpack.c.bf16 %v823_v48, %v823_v48 }
 0x3aa   :  { %804 = vmatmul.msk.bf16.vlgmr.msra.gmra.mxu2 %vm452_vm1, %v566_v4 }
 0x42d   :  { %v579_v32 = vpop.f32.mrf.mxu2 }
 0x42e   :  { %v583_v34 = vadd.f32 %v579_v32, %v444_v30 }
 0x430   :  { %824 = vtanh.f32 %v583_v34 }
 0x435   :  { %v581_v35 = vpop.f32.mrf.mxu2 }
 0x436   :  { %v825_v36 = vpop.eup %824 }
 0x437   :  { %v585_v37 = vpack.c.bf16 %v825_v36, %v825_v36 }
 0x439   :  { %805 = vmatmul.msk.bf16.vlgmr.msra.gmra.mxu3 %vm452_vm1, %v585_v37 }
 0x4bc   :  { %v598_v47 = vpop.f32.mrf.mxu3 }
 0x4bd   :  { %v602_v31 = vadd.f32 %v598_v47, %v448_v46 }
 0x4bf   :  { %826 = vtanh.f32 %v602_v31 }
 0x4c4   :  { %v600_v49 = vpop.f32.mrf.mxu3 }
 0x4c5   :  { %v827_v50 = vpop.eup %826 }
 0x4c6   :  { %v606_v51 = vsel %vm452_vm1, %v827_v50, 0 }
 0x4c7   :  { %v628_v52 = vand.u32 4294901760, %v606_v51 }
 0x4c9   :  { %674 = vmatmul.f32.vlgmr.msra.gmra.mxu1 %v628_v52  ;;  %v629_v53 = vsub.f32 %v606_v51, %v628_v52 }
 0x4cb   :  { %704 = vmatmul.f32.vlgmr.msrb.gmra.mxu2 %v629_v53  ;;  %v630_v54 = vand.u32 4294901760, %v629_v53 }
 0x4cd   :  { %731 = vmatmul.f32.vlgmr.msrb.gmra.mxu3 %v630_v54  ;;  %v631_v55 = vsub.f32 %v629_v53, %v630_v54 }
 0x4cf   :  { %v632_v16 = vand.u32 4294901760, %v631_v55 }
 0x4d1   :  { %633 = vmatmul.f32.vlgmr.msra.gmra.mxu0 %v632_v16  ;;  %789 = vmatmul.f32.vlgmr.msrb.gmra.mxu1 %v628_v52 }
 0x4d9   :  { %764 = vmatmul.f32.vlgmr.msrb.gmra.mxu0 %v628_v52 }
 0x546   :  { %v675_v13 = vpop.f32.mrf.mxu1 }
 0x54e   :  { %v634_v57 = vpop.f32.mrf.mxu0  ;;  %v705_v40 = vpop.f32.mrf.mxu2 }
 0x54f   :  { %v635_v33 = vadd.f32 %v811_v10, %v634_v57  ;;  %v790_v0 = vpop.f32.mrf.mxu1 }
 0x550   :  { %v732_v60 = vpop.f32.mrf.mxu3 }
 0x551   :  { %v676_v58 = vadd.f32 %v675_v13, %v635_v33 }
 0x553   :  { %v706_v59 = vadd.f32 %v705_v40, %v676_v58 }
 0x555   :  { %v733_v61 = vadd.f32 %v732_v60, %v706_v59 }
 0x556   :  { %v765_v62 = vpop.f32.mrf.mxu0 }
 0x557   :  { %v766_v63 = vadd.f32 %v765_v62, %v733_v61 }
 0x559   :  { %v791_v1 = vadd.f32 %v790_v0, %v766_v63 }
 0x55b   :  { %793 = vst [vmem:[%s992_s2] sm:$0xff] %v791_v1 }
 0x55c   :  { %798 = vsyncpa [#allocation3], 1 }

</bundles_post_ra>
